<compile_context>
chip_gen: v6e
topology: v6e:2x2x1
jax: 0.10.0
libtpu: 0.0.40
codegen_flags: <defaults>
</compile_context>

<pallas_src>
import functools

import jax
import jax.numpy as jnp
from jax.experimental import pallas as pl
from jax.experimental.pallas import tpu as pltpu


def _lm_criterion_kernel(n_rows, x_ref, t_ref, m_ref, out_ref, num_acc, den_acc):
    c = pl.program_id(0)            # "parallel" (core-split) axis
    i = pl.program_id(1)            # "arbitrary" (row-block) axis
    n_inner = pl.num_programs(1)
    tr = x_ref.shape[0]

    @pl.when(i == 0)
    def _():
        num_acc[...] = jnp.zeros_like(num_acc)
        den_acc[...] = jnp.zeros_like(den_acc)

    x = x_ref[...]                               # (TR, V) in native dtype
    tgt = t_ref[...]                             # (TR, 1) int32
    msk = m_ref[...].astype(jnp.float32)         # (TR, 1) float32

    # Row validity for ragged / clamped tail blocks of the (unpadded) input.
    row_start = (c * n_inner + i) * tr
    row_ids = jax.lax.broadcasted_iota(jnp.int32, (tr, 1), 0) + row_start
    valid = row_ids < n_rows                     # (TR, 1) bool

    # One-hot gather along the vocab (lane) axis.  At most one nonzero per row,
    # so the lane-sum is exact even in bf16; cast only the (TR,1) result to f32.
    vocab_ids = jax.lax.broadcasted_iota(jnp.int32, x.shape, 1)
    gathered = jnp.sum(jnp.where(vocab_ids == tgt, x, jnp.zeros_like(x)),
                       axis=1, keepdims=True).astype(jnp.float32)   # (TR, 1)
    # Select AFTER the gather so garbage (NaN/Inf) rows cannot poison the sum.
    picked = jnp.where(valid, gathered, 0.0)

    num_acc[...] += -picked * msk
    den_acc[...] += msk

    @pl.when(i == n_inner - 1)
    def _():
        num = jnp.sum(num_acc[...])
        den = jnp.sum(den_acc[...])
        r = jax.lax.broadcasted_iota(jnp.int32, (8, 128), 0)
        l = jax.lax.broadcasted_iota(jnp.int32, (8, 128), 1)
        out_ref[...] = jnp.where((r == 0) & (l == 0), num,
                                 jnp.where((r == 0) & (l == 1), den, 0.0))


def _pick_tile_rows(n_rows, vocab, itemsize):
    # Size the per-step working set to ~22 MiB: x block double-buffered
    # (2*V*itemsize per row) plus ~3 KiB/row for the lane-padded (TR,1)
    # target/mask blocks and the VMEM accumulators.  Safe for v7x's 64 MiB VMEM,
    # and large enough to sit on the flat part of the tile-size/BW curve.
    budget = 22 * 1024 * 1024
    bytes_per_row = 2 * vocab * itemsize + 3 * 1024
    tr = budget // bytes_per_row
    tr = max(8, min(int(tr), 2048))
    tr = (tr // 8) * 8
    tr = min(tr, ((n_rows + 7) // 8) * 8)        # don't exceed (rounded) problem
    return max(8, tr)


def language_model_criterion(inp, target, mask, *, tile_rows=None):
    """inp: (B, T, V) log-probs; target: (B, Tt) int; mask: (B, Tt) float."""
    B, T, V = inp.shape
    # glue: truncate to the input's time length (as in the PyTorch forward)
    target = target[:, :T]
    mask = mask[:, :T]

    N = B * T
    x2 = inp.reshape(N, V)                       # view; the big input is never padded/copied
    t2 = target.reshape(N, 1).astype(jnp.int32)
    m2 = mask.reshape(N, 1).astype(jnp.float32)

    if tile_rows is None:
        tile_rows = _pick_tile_rows(N, V, x2.dtype.itemsize)

    total_blocks = pl.cdiv(N, tile_rows)
    ncores = 2 if total_blocks >= 2 else 1       # v7x dual-TC split; harmless on 1-TC chips
    per_core = pl.cdiv(total_blocks, ncores)

    # Pad only the tiny target/mask columns so every (c, i) block is in-bounds;
    # padded rows carry mask = 0 and therefore contribute nothing.
    Np = ncores * per_core * tile_rows
    pad = Np - N
    if pad:
        t2 = jnp.concatenate([t2, jnp.zeros((pad, 1), t2.dtype)], axis=0)
        m2 = jnp.concatenate([m2, jnp.zeros((pad, 1), m2.dtype)], axis=0)

    def x_index(c, i):
        # Clamp fully out-of-range row blocks to the last real block; the
        # in-kernel row-validity predicate zeroes their contribution.
        return (jnp.minimum(c * per_core + i, total_blocks - 1), 0)

    kernel = functools.partial(_lm_criterion_kernel, N)

    flops = 4 * N * V            # compare + select + add (dominant streaming work)
    bytes_accessed = N * V * x2.dtype.itemsize + 2 * N * 4 + ncores * 8 * 128 * 4

    out = pl.pallas_call(
        kernel,
        out_shape=jax.ShapeDtypeStruct((ncores * 8, 128), jnp.float32),
        grid_spec=pltpu.PrefetchScalarGridSpec(
            num_scalar_prefetch=0,
            grid=(ncores, per_core),
            in_specs=[
                pl.BlockSpec((tile_rows, V), x_index),
                pl.BlockSpec((tile_rows, 1), lambda c, i: (c * per_core + i, 0)),
                pl.BlockSpec((tile_rows, 1), lambda c, i: (c * per_core + i, 0)),
            ],
            out_specs=pl.BlockSpec((8, 128), lambda c, i: (c, 0)),
            scratch_shapes=[pltpu.VMEM((tile_rows, 1), jnp.float32),
                            pltpu.VMEM((tile_rows, 1), jnp.float32)],
        ),
        compiler_params=pltpu.CompilerParams(
            dimension_semantics=("parallel", "arbitrary"),
            vmem_limit_bytes=40 * 1024 * 1024),
        cost_estimate=pl.CostEstimate(flops=flops, transcendentals=0,
                                      bytes_accessed=bytes_accessed),
    )(x2, t2, m2)

    partials = out.reshape(ncores, 8, 128)
    num = jnp.sum(partials[:, 0, 0])
    den = jnp.sum(partials[:, 0, 1])
    # NOTE: an all-zero mask yields 0/0 = NaN, matching the PyTorch module.
    return num / den


def _reference(inp, target, mask):
    T = inp.shape[1]
    target = target[:, :T]
    mask = mask[:, :T].astype(jnp.float32)
    picked = jnp.take_along_axis(inp, target[..., None], axis=2)[..., 0]
    return jnp.sum(-picked * mask) / jnp.sum(mask)


if __name__ == "__main__":
    key = jax.random.PRNGKey(0)
    B, T, V = 2, 9, 32
    k1, k2, k3 = jax.random.split(key, 3)

    logits = jax.random.normal(k1, (B, T, V), dtype=jnp.float32)
    logprobs = jax.nn.log_softmax(logits, axis=-1)
    # target / mask may be longer than T (the forward truncates them)
    target = jax.random.randint(k2, (B, T + 2), 0, V, dtype=jnp.int32)
    lengths = jnp.array([6, 9], dtype=jnp.int32)
    mask = (jnp.arange(T + 2)[None, :] < lengths[:, None]).astype(jnp.float32)

    ref = _reference(logprobs, target, mask)

    # Auto-sized tile (single block) and a forced small tile that exercises the
    # multi-block / ragged-tail / dual-core-split paths.
    out_auto = jax.block_until_ready(language_model_criterion(logprobs, target, mask))
    out_small = jax.block_until_ready(
        language_model_criterion(logprobs, target, mask, tile_rows=8))

    assert jnp.allclose(out_auto, ref, atol=1e-5, rtol=1e-5), (out_auto, ref)
    assert jnp.allclose(out_small, ref, atol=1e-5, rtol=1e-5), (out_small, ref)
    print("KERNEL_OK")
</pallas_src>

<mosaic_0001>
module attributes {stable_mosaic.version = 11 : i64} {
  func.func @_lm_criterion_kernel(%arg0: i32, %arg1: i32, %arg2: memref<24x32xf32, #tpu.memory_space<vmem>>, %arg3: memref<24x1xi32, #tpu.memory_space<vmem>>, %arg4: memref<24x1xf32, #tpu.memory_space<vmem>>, %arg5: memref<8x128xf32, #tpu.memory_space<vmem>>, %arg6: memref<24x1xf32, #tpu.memory_space<vmem>>, %arg7: memref<24x1xf32, #tpu.memory_space<vmem>>) attributes {dimension_semantics = [#tpu.dimension_semantics<parallel>, #tpu.dimension_semantics<arbitrary>], iteration_bounds = array<i64: 1, 1>, scalar_prefetch = 0 : i64, scratch_operands = 2 : i64, tpu.core_type = #tpu.core_type<tc>, window_params = [{transform_indices = @transform_0, window_bounds = array<i64: 24, 32>}, {transform_indices = @transform_1, window_bounds = array<i64: 24, 1>}, {transform_indices = @transform_2, window_bounds = array<i64: 24, 1>}, {transform_indices = @transform_3, window_bounds = array<i64: 8, 128>}]} {
    %c0_i32 = arith.constant 0 : i32
    %0 = arith.cmpi eq, %arg1, %c0_i32 : i32
    %1 = arith.extui %0 : i1 to i32
    %c0_i32_0 = arith.constant 0 : i32
    %2 = arith.cmpi ne, %1, %c0_i32_0 : i32
    scf.if %2 {
      %cst_19 = arith.constant 0.000000e+00 : f32
      %35 = vector.broadcast %cst_19 : f32 to vector<24x1xf32>
      %c0_20 = arith.constant 0 : index
      %c0_21 = arith.constant 0 : index
      %36 = vector.load %arg6[%c0_20, %c0_21] : memref<24x1xf32, #tpu.memory_space<vmem>>, vector<24x1xf32>
      tpu.vector_store %arg6[%c0_20, %c0_21], %35 {strides = array<i32>} : memref<24x1xf32, #tpu.memory_space<vmem>>, vector<24x1xf32>,
      %cst_22 = arith.constant 0.000000e+00 : f32
      %37 = vector.broadcast %cst_22 : f32 to vector<24x1xf32>
      %c0_23 = arith.constant 0 : index
      %c0_24 = arith.constant 0 : index
      %38 = vector.load %arg7[%c0_23, %c0_24] : memref<24x1xf32, #tpu.memory_space<vmem>>, vector<24x1xf32>
      tpu.vector_store %arg7[%c0_23, %c0_24], %37 {strides = array<i32>} : memref<24x1xf32, #tpu.memory_space<vmem>>, vector<24x1xf32>,
    } else {
    }
    %c0 = arith.constant 0 : index
    %c0_1 = arith.constant 0 : index
    %3 = vector.load %arg2[%c0, %c0_1] : memref<24x32xf32, #tpu.memory_space<vmem>>, vector<24x32xf32>
    %c0_2 = arith.constant 0 : index
    %c0_3 = arith.constant 0 : index
    %4 = vector.load %arg3[%c0_2, %c0_3] : memref<24x1xi32, #tpu.memory_space<vmem>>, vector<24x1xi32>
    %c0_4 = arith.constant 0 : index
    %c0_5 = arith.constant 0 : index
    %5 = vector.load %arg4[%c0_4, %c0_5] : memref<24x1xf32, #tpu.memory_space<vmem>>, vector<24x1xf32>
    %c1_i32 = arith.constant 1 : i32
    %6 = arith.muli %arg0, %c1_i32 : i32
    %7 = arith.addi %6, %arg1 : i32
    %c24_i32 = arith.constant 24 : i32
    %8 = arith.muli %7, %c24_i32 : i32
    %9 = tpu.iota {dimensions = array<i32: 0>} : vector<24x1xi32>
    %10 = vector.broadcast %8 : i32 to vector<24x1xi32>
    %11 = arith.addi %9, %10 : vector<24x1xi32>
    %c18_i32 = arith.constant 18 : i32
    %12 = vector.broadcast %c18_i32 : i32 to vector<24x1xi32>
    %13 = arith.cmpi slt, %11, %12 : vector<24x1xi32>
    %14 = tpu.iota {dimensions = array<i32: 1>} : vector<24x32xi32>
    %15 = vector.broadcast %4 : vector<24x1xi32> to vector<24x32xi32>
    %16 = arith.cmpi eq, %14, %15 : vector<24x32xi32>
    %cst = arith.constant 0.000000e+00 : f32
    %17 = vector.broadcast %cst : f32 to vector<24x32xf32>
    %18 = arith.select %16, %3, %17 : vector<24x32xi1>, vector<24x32xf32>
    %cst_6 = arith.constant dense<0.000000e+00> : vector<24xf32>
    %19 = vector.multi_reduction <add>, %18, %cst_6 [1] : vector<24x32xf32> to vector<24xf32>
    %20 = vector.shape_cast %19 : vector<24xf32> to vector<24x1xf32>
    %cst_7 = arith.constant 0.000000e+00 : f32
    %21 = vector.broadcast %cst_7 : f32 to vector<24x1xf32>
    %22 = arith.select %13, %20, %21 : vector<24x1xi1>, vector<24x1xf32>
    %c0_8 = arith.constant 0 : index
    %c0_9 = arith.constant 0 : index
    %23 = vector.load %arg6[%c0_8, %c0_9] : memref<24x1xf32, #tpu.memory_space<vmem>>, vector<24x1xf32>
    %cst_10 = arith.constant 0.000000e+00 : f32
    %24 = vector.broadcast %cst_10 : f32 to vector<24x1xf32>
    %25 = arith.subf %24, %22 : vector<24x1xf32>
    %26 = arith.mulf %25, %5 : vector<24x1xf32>
    %27 = arith.addf %23, %26 : vector<24x1xf32>
    %c0_11 = arith.constant 0 : index
    %c0_12 = arith.constant 0 : index
    %28 = vector.load %arg6[%c0_11, %c0_12] : memref<24x1xf32, #tpu.memory_space<vmem>>, vector<24x1xf32>
    tpu.vector_store %arg6[%c0_11, %c0_12], %27 {strides = array<i32>} : memref<24x1xf32, #tpu.memory_space<vmem>>, vector<24x1xf32>,
    %c0_13 = arith.constant 0 : index
    %c0_14 = arith.constant 0 : index
    %29 = vector.load %arg7[%c0_13, %c0_14] : memref<24x1xf32, #tpu.memory_space<vmem>>, vector<24x1xf32>
    %30 = arith.addf %29, %5 : vector<24x1xf32>
    %c0_15 = arith.constant 0 : index
    %c0_16 = arith.constant 0 : index
    %31 = vector.load %arg7[%c0_15, %c0_16] : memref<24x1xf32, #tpu.memory_space<vmem>>, vector<24x1xf32>
    tpu.vector_store %arg7[%c0_15, %c0_16], %30 {strides = array<i32>} : memref<24x1xf32, #tpu.memory_space<vmem>>, vector<24x1xf32>,
    %c0_i32_17 = arith.constant 0 : i32
    %32 = arith.cmpi eq, %arg1, %c0_i32_17 : i32
    %33 = arith.extui %32 : i1 to i32
    %c0_i32_18 = arith.constant 0 : i32
    %34 = arith.cmpi ne, %33, %c0_i32_18 : i32
    scf.if %34 {
      %c0_19 = arith.constant 0 : index
      %c0_20 = arith.constant 0 : index
      %35 = vector.load %arg6[%c0_19, %c0_20] : memref<24x1xf32, #tpu.memory_space<vmem>>, vector<24x1xf32>
      %36 = vector.shape_cast %35 : vector<24x1xf32> to vector<1x24x1xf32>
      %cst_21 = arith.constant dense<0.000000e+00> : vector<1xf32>
      %37 = vector.multi_reduction <add>, %36, %cst_21 [1, 2] : vector<1x24x1xf32> to vector<1xf32>
      %38 = vector.shape_cast %37 : vector<1xf32> to vector<1x1x1xf32>
      %39 = vector.extract %38[0, 0, 0] : f32 from vector<1x1x1xf32>
      %c0_22 = arith.constant 0 : index
      %c0_23 = arith.constant 0 : index
      %40 = vector.load %arg7[%c0_22, %c0_23] : memref<24x1xf32, #tpu.memory_space<vmem>>, vector<24x1xf32>
      %41 = vector.shape_cast %40 : vector<24x1xf32> to vector<1x24x1xf32>
      %cst_24 = arith.constant dense<0.000000e+00> : vector<1xf32>
      %42 = vector.multi_reduction <add>, %41, %cst_24 [1, 2] : vector<1x24x1xf32> to vector<1xf32>
      %43 = vector.shape_cast %42 : vector<1xf32> to vector<1x1x1xf32>
      %44 = vector.extract %43[0, 0, 0] : f32 from vector<1x1x1xf32>
      %45 = tpu.iota {dimensions = array<i32: 0>} : vector<8x128xi32>
      %46 = tpu.iota {dimensions = array<i32: 1>} : vector<8x128xi32>
      %c0_i32_25 = arith.constant 0 : i32
      %47 = vector.broadcast %c0_i32_25 : i32 to vector<8x128xi32>
      %48 = arith.cmpi eq, %45, %47 : vector<8x128xi32>
      %c0_i32_26 = arith.constant 0 : i32
      %49 = vector.broadcast %c0_i32_26 : i32 to vector<8x128xi32>
      %50 = arith.cmpi eq, %46, %49 : vector<8x128xi32>
      %51 = arith.andi %48, %50 : vector<8x128xi1>
      %c0_i32_27 = arith.constant 0 : i32
      %52 = vector.broadcast %c0_i32_27 : i32 to vector<8x128xi32>
      %53 = arith.cmpi eq, %45, %52 : vector<8x128xi32>
      %c1_i32_28 = arith.constant 1 : i32
      %54 = vector.broadcast %c1_i32_28 : i32 to vector<8x128xi32>
      %55 = arith.cmpi eq, %46, %54 : vector<8x128xi32>
      %56 = arith.andi %53, %55 : vector<8x128xi1>
      %cst_29 = arith.constant 0.000000e+00 : f32
      %57 = vector.broadcast %44 : f32 to vector<8x128xf32>
      %58 = vector.broadcast %cst_29 : f32 to vector<8x128xf32>
      %59 = arith.select %56, %57, %58 : vector<8x128xi1>, vector<8x128xf32>
      %60 = vector.broadcast %39 : f32 to vector<8x128xf32>
      %61 = arith.select %51, %60, %59 : vector<8x128xi1>, vector<8x128xf32>
      %c0_30 = arith.constant 0 : index
      %c0_31 = arith.constant 0 : index
      %62 = vector.load %arg5[%c0_30, %c0_31] : memref<8x128xf32, #tpu.memory_space<vmem>>, vector<8x128xf32>
      tpu.vector_store %arg5[%c0_30, %c0_31], %61 {strides = array<i32>} : memref<8x128xf32, #tpu.memory_space<vmem>>, vector<8x128xf32>,
    } else {
    }
    return
  }
  func.func @transform_0(%arg0: i32, %arg1: i32) -> (i32, i32) {
    %c1_i32 = arith.constant 1 : i32
    %0 = arith.muli %arg0, %c1_i32 : i32
    %1 = arith.addi %0, %arg1 : i32
    %c0_i32 = arith.constant 0 : i32
    %2 = arith.minsi %1, %c0_i32 : i32
    %c0_i32_0 = arith.constant 0 : i32
    %c0_i32_1 = arith.constant 0 : i32
    return %2, %c0_i32_0 : i32, i32
  }
  func.func @transform_1(%arg0: i32, %arg1: i32) -> (i32, i32) {
    %c1_i32 = arith.constant 1 : i32
    %0 = arith.muli %arg0, %c1_i32 : i32
    %1 = arith.addi %0, %arg1 : i32
    %c0_i32 = arith.constant 0 : i32
    %c0_i32_0 = arith.constant 0 : i32
    return %1, %c0_i32 : i32, i32
  }
  func.func @transform_2(%arg0: i32, %arg1: i32) -> (i32, i32) {
    %c1_i32 = arith.constant 1 : i32
    %0 = arith.muli %arg0, %c1_i32 : i32
    %1 = arith.addi %0, %arg1 : i32
    %c0_i32 = arith.constant 0 : i32
    %c0_i32_0 = arith.constant 0 : i32
    return %1, %c0_i32 : i32, i32
  }
  func.func @transform_3(%arg0: i32, %arg1: i32) -> (i32, i32) {
    %c0_i32 = arith.constant 0 : i32
    %c0_i32_0 = arith.constant 0 : i32
    return %arg0, %c0_i32 : i32, i32
  }
}

</mosaic_0001>

<bundles_post_ra>
// kernel: tpu_custom_call.1
= control target key start
LH: loop header
LB: loop body
LE: loop exit
PB: predicated region body
PF: predicated region fallthrough
CT: control target
= control target key end

     0   :  { %v289_v2 = vmov 0   ;;  %s367_s0 = inlined_call_operand.vmem [shape: f32[18,32], index: 0, kind: input, shape index: {}]   ;;  %s368_s1 = inlined_call_operand.vmem [shape: s32[24,1], index: 1, kind: input, shape index: {}]   ;;  %s369_s2 = inlined_call_operand.vmem [shape: f32[24,1], index: 2, kind: input, shape index: {}]   ;;  %s370_s3 = inlined_call_operand.hbm [shape: f32[8,128], index: 3, kind: output, shape index: {}]  }
   0x1   :  { %v105_v0 = vld [vmem:[%s368_s1] sm:$0xff]  ;;  %v107_v1 = vld [vmem:[%s368_s1 + $0x10] sm:$0xff]  ;;  %265 = vset.pattern.permute.xlu0 %v289_v2  ;;  %266 = vset.pattern.permute.xlu1 %v289_v2 }
   0x2   :  { %8 = vsyncpa [#allocation5], 0  ;;  %127 = vperm.xlu0 %265, %v105_v0   ;;  %133 = vperm.xlu1 %266, %v107_v1   ;;  %v106_v3 = vld [vmem:[%s368_s1 + $0x8] sm:$0xff]  ;;  %v113_v4 = vlaneseq  ;;  %v102_v6 = vld [vmem:[%s367_s0] sm:$0xff]  ;;  %vm141_vm0 = vcmask 261120   ;;  %vm95_vm4 = vcmask 7168  }
   0x3   :  { %v103_v11 = vld [vmem:[%s367_s0 + $0x8] sm:$0xff]  ;;  %v104_v12 = vld [vmem:[%s367_s0 + $0x10] sm:$0xff]  ;;  %v290_v18 = vmov 0.0   ;;  %v108_v19 = vld [vmem:[%s369_s2] sm:$0xff]  ;;  %s291_s28 = smov [#allocation4]  }
   0x4   :  { %v321_v5 = vand.u32 127, %v113_v4  ;;  %96 = vst.msk [vmem:[#allocation2] sm:$0xff] %vm95_vm4, %v290_v18  ;;  %99 = vst.msk [vmem:[#allocation3] sm:$0xff] %vm95_vm4, %v290_v18  ;;  %v109_v21 = vld [vmem:[%s369_s2 + $0x8] sm:$0xff]  ;;  %v110_v25 = vld [vmem:[%s369_s2 + $0x10] sm:$0xff]  ;;  %v114_v36 = vshrl.u32 %v113_v4, 7 }
   0x5   :  { %97 = vst.msk [vmem:[#allocation2 + $0x8] sm:$0xff] %vm95_vm4, %v290_v18  ;;  %98 = vst.msk [vmem:[#allocation2 + $0x10] sm:$0xff] %vm95_vm4, %v290_v18  ;;  %s232_s29 = sshll.u32 %s291_s28, 4  ;;  %s233_s29 = int_to_ptr.vmem [resolvable:$true] %s232_s29 }
   0x6   :  { %130 = vperm.xlu0 %265, %v106_v3   ;;  %100 = vst.msk [vmem:[#allocation3 + $0x8] sm:$0xff] %vm95_vm4, %v290_v18  ;;  %101 = vst.msk [vmem:[#allocation3 + $0x10] sm:$0xff] %vm95_vm4, %v290_v18  ;;  %v116_v40 = vadd.s32 16, %v114_v36  ;;  %vm216_vm6 = vcmp.eq.s32.totalorder %v114_v36, 0  ;;  %vm219_vm7 = vcmp.eq.s32.totalorder %v321_v5, 1  ;;  %vm217_vm8 = vcmp.eq.s32.totalorder %v321_v5, 0  ;;  %p272_p1 = scmp.lt.s32.totalorder %s233_s29, %s233_s29 }
   0x7   :  { %vm220_vm9 = vmand %vm216_vm6, %vm219_vm7  ;;  %s267_s4 = scalar_lea.vmem %s233_s29, 128 }
   0x8   :  { %vm123_vm5 = vcmp.lt.s32.totalorder %v116_v40, 18  ;;  %vm218_vm10 = vmand %vm216_vm6, %vm217_vm8  ;;  %p268_p0 = scmp.ne.s32.totalorder %s233_s29, %s267_s4  ;;  %p273_p2 = scmp.lt.s32.totalorder %s267_s4, %s267_s4 }
   0xa   :  { %p274_p3 = por %p273_p2, %p272_p1 }
   0xb   :  { %v170_v20 = vld [vmem:[#allocation3] sm:$0xff]  ;;  %v154_v39 = vld [vmem:[#allocation2] sm:$0xff] }
   0xc   :  { %v173_v23 = vadd.f32 %v170_v20, %v108_v19  ;;  %v155_v45 = vld [vmem:[#allocation2 + $0x8] sm:$0xff]  ;;  %v156_v51 = vld [vmem:[#allocation2 + $0x10] sm:$0xff]  ;;  %p275_p4 = pnand %p274_p3, %p268_p0 }
   0xd   :  { %v171_v22 = vld [vmem:[#allocation3 + $0x8] sm:$0xff]  ;;  %v172_v26 = vld [vmem:[#allocation3 + $0x10] sm:$0xff] }
   0xe   :  { %v174_v24 = vadd.f32 %v171_v22, %v109_v21  ;;  %176 = vst.msk [vmem:[#allocation3] sm:$0xff] %vm95_vm4, %v173_v23  ;;  %v175_v27 = vadd.f32 %v172_v26, %v110_v25 }
  0x10   :  { %177 = vst.msk [vmem:[#allocation3 + $0x8] sm:$0xff] %vm95_vm4, %v174_v24  ;;  %178 = vst.msk [vmem:[#allocation3 + $0x10] sm:$0xff] %vm95_vm4, %v175_v27 }
  0x15   :  { %v199_v28 = vld [vmem:[#allocation3] sm:$0xff] }
  0x16   :  { %v202_v30 = vsel %vm95_vm4, %v199_v28, 0.0 }
  0x17   :  { %v200_v29 = vld [vmem:[#allocation3 + $0x8] sm:$0xff]  ;;  %v201_v32 = vld [vmem:[#allocation3 + $0x10] sm:$0xff] }
  0x18   :  { %v203_v31 = vsel %vm95_vm4, %v200_v29, 0.0  ;;  %v205_v34 = vsel %vm95_vm4, %v201_v32, 0.0 }
  0x19   :  { %v204_v33 = vadd.f32 %v203_v31, %v202_v30 }
  0x1b   :  { %v206_v35 = vadd.f32 %v205_v34, %v204_v33 }
  0x7d   :  { %v128_v7 = vpop.permute.xlu0 %127  ;;  %v134_v8 = vpop.permute.xlu1 %133 }
  0x7e   :  { %vm135_vm1 = vcmp.eq.s32.totalorder %v321_v5, %v128_v7  ;;  %vm137_vm2 = vcmp.eq.s32.totalorder %v321_v5, %v134_v8 }
  0x7f   :  { %v138_v9 = vsel %vm135_vm1, %v102_v6, 0.0  ;;  %v140_v15 = vsel %vm137_vm2, %v104_v12, 0.0 }
  0x80   :  { %v142_v10 = vsel %vm141_vm0, %v138_v9, 0.0  ;;  %v148_v17 = vsel %vm141_vm0, %v140_v15, 0.0 }
  0x81   :  { %v131_v13 = vpop.permute.xlu0 %130  ;;  %143 = vadd.xlane.f32.xlu1 %v142_v10 }
  0x82   :  { %vm136_vm3 = vcmp.eq.s32.totalorder %v321_v5, %v131_v13 }
  0x83   :  { %v139_v14 = vsel %vm136_vm3, %v103_v11, 0.0 }
  0x84   :  { %v145_v16 = vsel %vm141_vm0, %v139_v14, 0.0 }
  0x85   :  { %146 = vadd.xlane.f32.xlu0 %v145_v16 }
  0x89   :  { %149 = vadd.xlane.f32.xlu0 %v148_v17 }
  0x8d   :  { %207 = vadd.xlane.f32.xlu0 %v206_v35 }
 0x10a   :  { %v144_v37 = vpop.xlane.xlu1 %143 }
 0x10b   :  { %v157_v38 = vsub.f32 0.0, %v144_v37 }
 0x10d   :  { %v160_v41 = vmul.f32 %v157_v38, %v108_v19 }
 0x10e   :  { %v147_v42 = vpop.xlane.xlu0 %146 }
 0x10f   :  { %v163_v43 = vadd.f32 %v160_v41, %v154_v39  ;;  %v158_v44 = vsub.f32 0.0, %v147_v42 }
 0x111   :  { %167 = vst.msk [vmem:[#allocation2] sm:$0xff] %vm95_vm4, %v163_v43  ;;  %v161_v46 = vmul.f32 %v158_v44, %v109_v21 }
 0x112   :  { %v150_v47 = vpop.xlane.xlu0 %149 }
 0x113   :  { %v164_v48 = vadd.f32 %v161_v46, %v155_v45  ;;  %v153_v49 = vsel %vm123_vm5, %v150_v47, 0.0 }
 0x114   :  { %v159_v50 = vsub.f32 0.0, %v153_v49 }
 0x115   :  { %168 = vst.msk [vmem:[#allocation2 + $0x8] sm:$0xff] %vm95_vm4, %v164_v48 }
 0x116   :  { %v162_v52 = vmul.f32 %v159_v50, %v110_v25  ;;  %v208_v62 = vpop.xlane.xlu0 %207 }
 0x117   :  { %v209_v63 = vrot.slane %v208_v62, 4 }
 0x118   :  { %v165_v53 = vadd.f32 %v162_v52, %v156_v51  ;;  %v182_v55 = vld [vmem:[#allocation2] sm:$0xff] }
 0x119   :  { %v185_v57 = vsel %vm95_vm4, %v182_v55, 0.0  ;;  %v210_v0 = vadd.f32 %v209_v63, %v208_v62 }
 0x11a   :  { %169 = vst.msk [vmem:[#allocation2 + $0x10] sm:$0xff] %vm95_vm4, %v165_v53 }
 0x11b   :  { %v211_v1 = vrot.slane %v210_v0, 2 }
 0x11c   :  { %v183_v54 = vld [vmem:[#allocation2 + $0x8] sm:$0xff] }
 0x11d   :  { %v186_v56 = vsel %vm95_vm4, %v183_v54, 0.0  ;;  %v212_v6 = vadd.f32 %v211_v1, %v210_v0 }
 0x11e   :  { %v187_v59 = vadd.f32 %v186_v56, %v185_v57 }
 0x11f   :  { %v213_v9 = vrot.slane %v212_v6, 1 }
 0x121   :  { %v184_v58 = vld [vmem:[#allocation2 + $0x10] sm:$0xff]  ;;  %v214_v12 = vadd.f32 %v213_v9, %v212_v6 }
 0x122   :  { %v188_v60 = vsel %vm95_vm4, %v184_v58, 0.0 }
 0x123   :  { %v189_v61 = vadd.f32 %v188_v60, %v187_v59 }
 0x125   :  { %190 = vadd.xlane.f32.xlu1 %v189_v61 }
 0x1ae   :  { %v191_v2 = vpop.xlane.xlu1 %190 }
 0x1af   :  { %v192_v3 = vrot.slane %v191_v2, 4 }
 0x1b1   :  { %v193_v4 = vadd.f32 %v192_v3, %v191_v2 }
 0x1b3   :  { %v194_v7 = vrot.slane %v193_v4, 2 }
 0x1b5   :  { %v195_v8 = vadd.f32 %v194_v7, %v193_v4 }
 0x1b7   :  { %v196_v10 = vrot.slane %v195_v8, 1 }
 0x1b9   :  { %v197_v11 = vadd.f32 %v196_v10, %v195_v8 }
 0x1bb   :  { %258 = vpush %v197_v11 }
 0x1bc   :  { %260 = vpush %v214_v12 }
 0x1ec   :  { %s259_s2 = spop %258 }
 0x1ed   :  { %v223_v13 = vstv %s259_s2  ;;  %s261_s30 = spop %260 }
 0x1ee   :  { %v221_v14 = vstv %s261_s30 }
 0x1ef   :  { %v222_v15 = vsel %vm220_vm9, %v221_v14, 0.0 }
 0x1f0   :  { %v224_v16 = vsel %vm218_vm10, %v223_v13, %v222_v15 }
 0x1f1   :  { %225 = vst [vmem:[#allocation4] sm:$0xff] %v224_v16 }
 0x1f2   :  { %278 = shalt.err (!%p275_p4)
}
 0x1f3   :  { %235 = dma.vmem_to_hbm [thread:$0]  %s233_s29, 128, %s370_s3, [#allocation5]  }
 0x1f4   :  { %287 = dma.done.wait [#allocation5], 128  }
 0x1f5   :  { %288 = vsyncadd [#allocation5], 4294967168 }
 0x1f6   :  { %239 = vsyncpa [#allocation5], 1 }

</bundles_post_ra>
